<compile_context>
chip_gen: v6e
topology: v6e:2x2x1
jax: 0.10.0
libtpu: 0.0.40
codegen_flags: <defaults>
</compile_context>

<pallas_src>
import functools

import jax
import jax.numpy as jnp
import numpy as np
from jax import lax
from jax.experimental import pallas as pl
from jax.experimental.pallas import tpu as pltpu


def basic_block_kernel(x_ref, w1_ref, b1_ref, w2_ref, b2_ref, out_ref,
                       xpad_ref, ypad_ref, *, H, L_in, L_out):
    """One lane-group of G batch images per grid step, (rows, G*W*C) layout.

    x_ref   : (1, H, L_in)      f32  input tile (also the identity branch)
    w1_ref  : (3, L_in, L_out)  bf16 dy-banded conv1 weights (BN1 scale folded)
    b1_ref  : (1, L_out)        f32  BN1 bias, lane-tiled
    w2_ref  : (3, L_out, L_out) bf16 dy-banded conv2 weights (BN2 scale folded)
    b2_ref  : (1, L_out)        f32  BN2 bias, lane-tiled
    out_ref : (1, H, L_out)     f32
    xpad_ref: (H+2, L_in)       bf16 scratch, 1-row top/bottom zero halo
    ypad_ref: (H+2, L_out)      bf16 scratch, 1-row top/bottom zero halo
    """
    f32, bf16 = jnp.float32, jnp.bfloat16

    def stage(dst_ref, val, width):
        # Only the top/bottom halo rows are zeroed (full-lane-width stores);
        # there are no halo columns because dx is banded into the weights.
        # Re-zeroed every step: a "parallel" grid axis may be split across
        # megacore TensorCores, each with its own (uninitialized) scratch.
        zrow = jnp.zeros((1, width), bf16)
        dst_ref[0:1, :] = zrow
        dst_ref[H + 1:H + 2, :] = zrow
        dst_ref[1:1 + H, :] = val.astype(bf16)      # single f32->bf16 cast

    def conv3x3(src_ref, w_ref):
        # 3 dy-shifted matmuls; dx is already folded into the banded weights,
        # so reads are lane-offset-0 / sublane-offset-dy only.
        n_out = w_ref.shape[2]
        acc = jnp.zeros((H, n_out), f32)
        for dy in range(3):                          # static unroll
            acc = acc + jnp.dot(src_ref[dy:dy + H, :], w_ref[dy],
                                preferred_element_type=f32)
        return acc

    x = x_ref[0]                                     # (H, L_in) f32, identity
    stage(xpad_ref, x, L_in)

    # conv1 (bn1 scale folded into weights) -> bias -> relu, f32 after MXU.
    y = jnp.maximum(conv3x3(xpad_ref, w1_ref) + b1_ref[...], 0.0)

    stage(ypad_ref, y, L_out)

    # conv2 (bn2 scale folded) -> bias -> residual add (identity read from the
    # already-resident f32 input tile, no second HBM stream) -> relu.
    y2 = conv3x3(ypad_ref, w2_ref) + b2_ref[...]
    out_ref[0] = jnp.maximum(y2 + x, 0.0)


def _banded_dx_weights(w_hwio, width, group):
    """(3,3,Ci,Co) HWIO -> (3, G*W*Ci, G*W*Co) bf16 banded weights.

    Per dy: block-tridiagonal over the width axis, block (wi -> wo) holds
    w[dy, wi - wo + 1]; SAME horizontal padding falls out of the band edges.
    Block-diagonal over the G lane-grouped batch images.
    """
    kh, kw, ci, co = w_hwio.shape
    wf = w_hwio.astype(jnp.float32)
    wi = jnp.arange(width)[:, None]
    wo = jnp.arange(width)[None, :]
    dx = wi - wo + (kw // 2)                          # tap index for (wi, wo)
    valid = ((dx >= 0) & (dx < kw)).astype(jnp.float32)
    band = wf[:, jnp.clip(dx, 0, kw - 1)] * valid[None, :, :, None, None]
    band = band.transpose(0, 1, 3, 2, 4).reshape(kh, width * ci, width * co)
    if group > 1:
        eye = jnp.eye(group, dtype=jnp.float32)
        band = jnp.einsum('gh,kio->kgiho', eye, band)
        band = band.reshape(kh, group * width * ci, group * width * co)
    return band.astype(jnp.bfloat16)


def basic_block(x_nchw, w1, s1, b1, w2, s2, b2):
    """x_nchw: (N, C, H, W) f32; conv weights HWIO; inference BN folded to (s, b)."""
    x = jnp.transpose(x_nchw, (0, 2, 3, 1))          # -> NHWC
    N, H, W, Cin = x.shape
    Cout = w1.shape[3]
    assert Cin == Cout, "identity shortcut requires Cin == Cout (downsample=None)"

    # Fold G batch images into the lane dim so the output last dim reaches a
    # multiple of 128 lanes (unmasked stores, K = N = 128 matmuls).
    lane = W * Cin
    G = max(1, min(N, 128 // lane)) if lane < 128 else 1
    while N % G:
        G -= 1
    NG = N // G
    L_in, L_out = G * W * Cin, G * W * Cout

    # Gate the W^2-scaling banded-weight trick (expanded weights must stay a
    # small fraction of v7x's 64 MiB VMEM).
    wbytes = (3 * L_in * L_out + 3 * L_out * L_out) * 2
    assert wbytes <= 8 * 1024 * 1024, "banded-weight path gated to small W*C"

    # (N,H,W,C) -> (NG, H, G*W*C): lane index = g*(W*C) + w*C + c.
    x2d = (x.reshape(NG, G, H, W * Cin)
             .transpose(0, 2, 1, 3)
             .reshape(NG, H, L_in))

    # Fold BN scale into the conv weights (f32) before banding / bf16 cast.
    wb1 = _banded_dx_weights(w1 * s1[None, None, None, :], W, G)   # (3, L_in, L_out)
    wb2 = _banded_dx_weights(w2 * s2[None, None, None, :], W, G)   # (3, L_out, L_out)
    b1t = jnp.tile(b1.astype(jnp.float32), G * W).reshape(1, L_out)
    b2t = jnp.tile(b2.astype(jnp.float32), G * W).reshape(1, L_out)

    kernel = functools.partial(basic_block_kernel, H=H, L_in=L_in, L_out=L_out)

    out2d = pl.pallas_call(
        kernel,
        out_shape=jax.ShapeDtypeStruct((NG, H, L_out), jnp.float32),
        grid_spec=pltpu.PrefetchScalarGridSpec(
            num_scalar_prefetch=0,
            grid=(NG,),
            in_specs=[
                pl.BlockSpec((1, H, L_in), lambda n: (n, 0, 0)),
                # Constant-index operands: single-buffered (never re-fetched).
                pl.BlockSpec((3, L_in, L_out), lambda n: (0, 0, 0),
                             pipeline_mode=pl.Buffered(1)),
                pl.BlockSpec((1, L_out), lambda n: (0, 0),
                             pipeline_mode=pl.Buffered(1)),
                pl.BlockSpec((3, L_out, L_out), lambda n: (0, 0, 0),
                             pipeline_mode=pl.Buffered(1)),
                pl.BlockSpec((1, L_out), lambda n: (0, 0),
                             pipeline_mode=pl.Buffered(1)),
            ],
            out_specs=pl.BlockSpec((1, H, L_out), lambda n: (n, 0, 0)),
            scratch_shapes=[
                pltpu.VMEM((H + 2, L_in), jnp.bfloat16),
                pltpu.VMEM((H + 2, L_out), jnp.bfloat16),
            ],
        ),
        compiler_params=pltpu.CompilerParams(
            dimension_semantics=("parallel",),
            # Tiny footprint here; capped well under v7x's 64 MiB physical
            # VMEM so larger (still-gated) shapes stay portable.
            vmem_limit_bytes=48 * 1024 * 1024,
        ),
    )(x2d, wb1, b1t, wb2, b2t)

    out = (out2d.reshape(NG, H, G, W * Cout)
                 .transpose(0, 2, 1, 3)
                 .reshape(N, H, W, Cout))
    return jnp.transpose(out, (0, 3, 1, 2))          # -> NCHW


def ref_basic_block(x_nchw, w1, s1, b1, w2, s2, b2):
    """Pure-JAX f32 reference (NHWC convs via lax) for correctness checking."""
    x = jnp.transpose(x_nchw, (0, 2, 3, 1))
    dn = ('NHWC', 'HWIO', 'NHWC')
    y = lax.conv_general_dilated(x, w1, (1, 1), 'SAME', dimension_numbers=dn)
    y = jnp.maximum(y * s1.reshape(1, 1, 1, -1) + b1.reshape(1, 1, 1, -1), 0.0)
    y = lax.conv_general_dilated(y, w2, (1, 1), 'SAME', dimension_numbers=dn)
    y = y * s2.reshape(1, 1, 1, -1) + b2.reshape(1, 1, 1, -1)
    out = jnp.maximum(y + x, 0.0)
    return jnp.transpose(out, (0, 3, 1, 2))


def fold_bn(gamma, beta, mean, var, eps=1e-5):
    inv = gamma / jnp.sqrt(var + eps)
    return inv, beta - mean * inv


if __name__ == "__main__":
    key = jax.random.PRNGKey(0)
    ks = jax.random.split(key, 11)

    N, C, H, W = 2, 4, 16, 16      # in_channel == out_channel, stride=1, no downsample
    Cin = Cout = C

    x = jax.random.normal(ks[0], (N, C, H, W), jnp.float32)

    # Conv weights (HWIO layout for the NHWC kernel), deterministic init.
    w1 = jax.random.normal(ks[1], (3, 3, Cin, Cout), jnp.float32) * 0.1
    w2 = jax.random.normal(ks[2], (3, 3, Cout, Cout), jnp.float32) * 0.1

    # BatchNorm parameters / running stats (inference mode), non-trivial values.
    g1 = 1.0 + 0.1 * jax.random.normal(ks[3], (Cout,), jnp.float32)
    be1 = 0.1 * jax.random.normal(ks[4], (Cout,), jnp.float32)
    m1 = 0.1 * jax.random.normal(ks[5], (Cout,), jnp.float32)
    v1 = jax.random.uniform(ks[6], (Cout,), jnp.float32, 0.5, 1.5)
    g2 = 1.0 + 0.1 * jax.random.normal(ks[7], (Cout,), jnp.float32)
    be2 = 0.1 * jax.random.normal(ks[8], (Cout,), jnp.float32)
    m2 = 0.1 * jax.random.normal(ks[9], (Cout,), jnp.float32)
    v2 = jax.random.uniform(ks[10], (Cout,), jnp.float32, 0.5, 1.5)

    s1, b1 = fold_bn(g1, be1, m1, v1)
    s2, b2 = fold_bn(g2, be2, m2, v2)

    out = jax.block_until_ready(basic_block(x, w1, s1, b1, w2, s2, b2))
    ref = jax.block_until_ready(ref_basic_block(x, w1, s1, b1, w2, s2, b2))

    # bf16 MXU operands (f32 accumulation) over two convs -> slightly relaxed
    # tolerance against the all-f32 reference.
    np.testing.assert_allclose(np.asarray(out), np.asarray(ref),
                               rtol=2e-2, atol=2e-2)
    print("KERNEL_OK")
</pallas_src>

<mosaic_0001>
module attributes {stable_mosaic.version = 11 : i64} {
  func.func @basic_block_kernel(%arg0: i32, %arg1: memref<1x16x128xf32, #tpu.memory_space<vmem>>, %arg2: memref<3x128x128xbf16, #tpu.memory_space<vmem>>, %arg3: memref<1x128xf32, #tpu.memory_space<vmem>>, %arg4: memref<3x128x128xbf16, #tpu.memory_space<vmem>>, %arg5: memref<1x128xf32, #tpu.memory_space<vmem>>, %arg6: memref<1x16x128xf32, #tpu.memory_space<vmem>>, %arg7: memref<18x128xbf16, #tpu.memory_space<vmem>>, %arg8: memref<18x128xbf16, #tpu.memory_space<vmem>>) attributes {dimension_semantics = [#tpu.dimension_semantics<parallel>], iteration_bounds = array<i64: 1>, scalar_prefetch = 0 : i64, scratch_operands = 2 : i64, tpu.core_type = #tpu.core_type<tc>, window_params = [{transform_indices = @transform_0, window_bounds = array<i64: 1, 16, 128>}, {pipeline_mode = #tpu.pipeline_mode<synchronous>, transform_indices = @transform_1, window_bounds = array<i64: 3, 128, 128>}, {pipeline_mode = #tpu.pipeline_mode<synchronous>, transform_indices = @transform_2, window_bounds = array<i64: 1, 128>}, {pipeline_mode = #tpu.pipeline_mode<synchronous>, transform_indices = @transform_3, window_bounds = array<i64: 3, 128, 128>}, {pipeline_mode = #tpu.pipeline_mode<synchronous>, transform_indices = @transform_4, window_bounds = array<i64: 1, 128>}, {transform_indices = @transform_5, window_bounds = array<i64: 1, 16, 128>}]} {
    %c0 = arith.constant 0 : index
    %c0_0 = arith.constant 0 : index
    %c0_1 = arith.constant 0 : index
    %0 = vector.load %arg1[%c0, %c0_0, %c0_1] : memref<1x16x128xf32, #tpu.memory_space<vmem>>, vector<1x16x128xf32>
    %1 = vector.shape_cast %0 : vector<1x16x128xf32> to vector<16x128xf32>
    %cst = arith.constant 0.000000e+00 : bf16
    %2 = vector.broadcast %cst : bf16 to vector<1x128xbf16>
    %c0_2 = arith.constant 0 : index
    %c0_3 = arith.constant 0 : index
    %3 = vector.load %arg7[%c0_2, %c0_3] : memref<18x128xbf16, #tpu.memory_space<vmem>>, vector<1x128xbf16>
    tpu.vector_store %arg7[%c0_2, %c0_3], %2 {strides = array<i32>} : memref<18x128xbf16, #tpu.memory_space<vmem>>, vector<1x128xbf16>,
    %c17 = arith.constant 17 : index
    %c0_4 = arith.constant 0 : index
    %4 = vector.load %arg7[%c17, %c0_4] : memref<18x128xbf16, #tpu.memory_space<vmem>>, vector<1x128xbf16>
    tpu.vector_store %arg7[%c17, %c0_4], %2 {strides = array<i32>} : memref<18x128xbf16, #tpu.memory_space<vmem>>, vector<1x128xbf16>,
    %5 = arith.truncf %1 : vector<16x128xf32> to vector<16x128xbf16>
    %c1 = arith.constant 1 : index
    %c0_5 = arith.constant 0 : index
    %6 = vector.load %arg7[%c1, %c0_5] : memref<18x128xbf16, #tpu.memory_space<vmem>>, vector<16x128xbf16>
    tpu.vector_store %arg7[%c1, %c0_5], %5 {strides = array<i32>} : memref<18x128xbf16, #tpu.memory_space<vmem>>, vector<16x128xbf16>,
    %cst_6 = arith.constant 0.000000e+00 : f32
    %7 = vector.broadcast %cst_6 : f32 to vector<16x128xf32>
    %c0_7 = arith.constant 0 : index
    %c0_8 = arith.constant 0 : index
    %8 = vector.load %arg7[%c0_7, %c0_8] : memref<18x128xbf16, #tpu.memory_space<vmem>>, vector<16x128xbf16>
    %c0_9 = arith.constant 0 : index
    %c0_10 = arith.constant 0 : index
    %c0_11 = arith.constant 0 : index
    %9 = vector.load %arg2[%c0_9, %c0_10, %c0_11] : memref<3x128x128xbf16, #tpu.memory_space<vmem>>, vector<1x128x128xbf16>
    %10 = vector.shape_cast %9 : vector<1x128x128xbf16> to vector<128x128xbf16>
    %cst_12 = arith.constant dense<0.000000e+00> : vector<16x128xf32>
    %11 = tpu.matmul %8, %10, %cst_12 {dimension_numbers = #tpu.dot_dimension_numbers<[1], [0], [0], [1], [0, 0, 1, 1], [], []>} : vector<16x128xbf16>, vector<128x128xbf16>, vector<16x128xf32> -> vector<16x128xf32>
    %12 = arith.addf %7, %11 : vector<16x128xf32>
    %c1_13 = arith.constant 1 : index
    %c0_14 = arith.constant 0 : index
    %13 = vector.load %arg7[%c1_13, %c0_14] : memref<18x128xbf16, #tpu.memory_space<vmem>>, vector<16x128xbf16>
    %c1_15 = arith.constant 1 : index
    %c0_16 = arith.constant 0 : index
    %c0_17 = arith.constant 0 : index
    %14 = vector.load %arg2[%c1_15, %c0_16, %c0_17] : memref<3x128x128xbf16, #tpu.memory_space<vmem>>, vector<1x128x128xbf16>
    %15 = vector.shape_cast %14 : vector<1x128x128xbf16> to vector<128x128xbf16>
    %cst_18 = arith.constant dense<0.000000e+00> : vector<16x128xf32>
    %16 = tpu.matmul %13, %15, %cst_18 {dimension_numbers = #tpu.dot_dimension_numbers<[1], [0], [0], [1], [0, 0, 1, 1], [], []>} : vector<16x128xbf16>, vector<128x128xbf16>, vector<16x128xf32> -> vector<16x128xf32>
    %17 = arith.addf %12, %16 : vector<16x128xf32>
    %c2 = arith.constant 2 : index
    %c0_19 = arith.constant 0 : index
    %18 = vector.load %arg7[%c2, %c0_19] : memref<18x128xbf16, #tpu.memory_space<vmem>>, vector<16x128xbf16>
    %c2_20 = arith.constant 2 : index
    %c0_21 = arith.constant 0 : index
    %c0_22 = arith.constant 0 : index
    %19 = vector.load %arg2[%c2_20, %c0_21, %c0_22] : memref<3x128x128xbf16, #tpu.memory_space<vmem>>, vector<1x128x128xbf16>
    %20 = vector.shape_cast %19 : vector<1x128x128xbf16> to vector<128x128xbf16>
    %cst_23 = arith.constant dense<0.000000e+00> : vector<16x128xf32>
    %21 = tpu.matmul %18, %20, %cst_23 {dimension_numbers = #tpu.dot_dimension_numbers<[1], [0], [0], [1], [0, 0, 1, 1], [], []>} : vector<16x128xbf16>, vector<128x128xbf16>, vector<16x128xf32> -> vector<16x128xf32>
    %22 = arith.addf %17, %21 : vector<16x128xf32>
    %c0_24 = arith.constant 0 : index
    %c0_25 = arith.constant 0 : index
    %23 = vector.load %arg3[%c0_24, %c0_25] : memref<1x128xf32, #tpu.memory_space<vmem>>, vector<1x128xf32>
    %24 = vector.broadcast %23 : vector<1x128xf32> to vector<16x128xf32>
    %25 = arith.addf %22, %24 : vector<16x128xf32>
    %cst_26 = arith.constant 0.000000e+00 : f32
    %26 = vector.broadcast %cst_26 : f32 to vector<16x128xf32>
    %27 = arith.maximumf %25, %26 : vector<16x128xf32>
    %cst_27 = arith.constant 0.000000e+00 : bf16
    %28 = vector.broadcast %cst_27 : bf16 to vector<1x128xbf16>
    %c0_28 = arith.constant 0 : index
    %c0_29 = arith.constant 0 : index
    %29 = vector.load %arg8[%c0_28, %c0_29] : memref<18x128xbf16, #tpu.memory_space<vmem>>, vector<1x128xbf16>
    tpu.vector_store %arg8[%c0_28, %c0_29], %28 {strides = array<i32>} : memref<18x128xbf16, #tpu.memory_space<vmem>>, vector<1x128xbf16>,
    %c17_30 = arith.constant 17 : index
    %c0_31 = arith.constant 0 : index
    %30 = vector.load %arg8[%c17_30, %c0_31] : memref<18x128xbf16, #tpu.memory_space<vmem>>, vector<1x128xbf16>
    tpu.vector_store %arg8[%c17_30, %c0_31], %28 {strides = array<i32>} : memref<18x128xbf16, #tpu.memory_space<vmem>>, vector<1x128xbf16>,
    %31 = arith.truncf %27 : vector<16x128xf32> to vector<16x128xbf16>
    %c1_32 = arith.constant 1 : index
    %c0_33 = arith.constant 0 : index
    %32 = vector.load %arg8[%c1_32, %c0_33] : memref<18x128xbf16, #tpu.memory_space<vmem>>, vector<16x128xbf16>
    tpu.vector_store %arg8[%c1_32, %c0_33], %31 {strides = array<i32>} : memref<18x128xbf16, #tpu.memory_space<vmem>>, vector<16x128xbf16>,
    %cst_34 = arith.constant 0.000000e+00 : f32
    %33 = vector.broadcast %cst_34 : f32 to vector<16x128xf32>
    %c0_35 = arith.constant 0 : index
    %c0_36 = arith.constant 0 : index
    %34 = vector.load %arg8[%c0_35, %c0_36] : memref<18x128xbf16, #tpu.memory_space<vmem>>, vector<16x128xbf16>
    %c0_37 = arith.constant 0 : index
    %c0_38 = arith.constant 0 : index
    %c0_39 = arith.constant 0 : index
    %35 = vector.load %arg4[%c0_37, %c0_38, %c0_39] : memref<3x128x128xbf16, #tpu.memory_space<vmem>>, vector<1x128x128xbf16>
    %36 = vector.shape_cast %35 : vector<1x128x128xbf16> to vector<128x128xbf16>
    %cst_40 = arith.constant dense<0.000000e+00> : vector<16x128xf32>
    %37 = tpu.matmul %34, %36, %cst_40 {dimension_numbers = #tpu.dot_dimension_numbers<[1], [0], [0], [1], [0, 0, 1, 1], [], []>} : vector<16x128xbf16>, vector<128x128xbf16>, vector<16x128xf32> -> vector<16x128xf32>
    %38 = arith.addf %33, %37 : vector<16x128xf32>
    %c1_41 = arith.constant 1 : index
    %c0_42 = arith.constant 0 : index
    %39 = vector.load %arg8[%c1_41, %c0_42] : memref<18x128xbf16, #tpu.memory_space<vmem>>, vector<16x128xbf16>
    %c1_43 = arith.constant 1 : index
    %c0_44 = arith.constant 0 : index
    %c0_45 = arith.constant 0 : index
    %40 = vector.load %arg4[%c1_43, %c0_44, %c0_45] : memref<3x128x128xbf16, #tpu.memory_space<vmem>>, vector<1x128x128xbf16>
    %41 = vector.shape_cast %40 : vector<1x128x128xbf16> to vector<128x128xbf16>
    %cst_46 = arith.constant dense<0.000000e+00> : vector<16x128xf32>
    %42 = tpu.matmul %39, %41, %cst_46 {dimension_numbers = #tpu.dot_dimension_numbers<[1], [0], [0], [1], [0, 0, 1, 1], [], []>} : vector<16x128xbf16>, vector<128x128xbf16>, vector<16x128xf32> -> vector<16x128xf32>
    %43 = arith.addf %38, %42 : vector<16x128xf32>
    %c2_47 = arith.constant 2 : index
    %c0_48 = arith.constant 0 : index
    %44 = vector.load %arg8[%c2_47, %c0_48] : memref<18x128xbf16, #tpu.memory_space<vmem>>, vector<16x128xbf16>
    %c2_49 = arith.constant 2 : index
    %c0_50 = arith.constant 0 : index
    %c0_51 = arith.constant 0 : index
    %45 = vector.load %arg4[%c2_49, %c0_50, %c0_51] : memref<3x128x128xbf16, #tpu.memory_space<vmem>>, vector<1x128x128xbf16>
    %46 = vector.shape_cast %45 : vector<1x128x128xbf16> to vector<128x128xbf16>
    %cst_52 = arith.constant dense<0.000000e+00> : vector<16x128xf32>
    %47 = tpu.matmul %44, %46, %cst_52 {dimension_numbers = #tpu.dot_dimension_numbers<[1], [0], [0], [1], [0, 0, 1, 1], [], []>} : vector<16x128xbf16>, vector<128x128xbf16>, vector<16x128xf32> -> vector<16x128xf32>
    %48 = arith.addf %43, %47 : vector<16x128xf32>
    %c0_53 = arith.constant 0 : index
    %c0_54 = arith.constant 0 : index
    %49 = vector.load %arg5[%c0_53, %c0_54] : memref<1x128xf32, #tpu.memory_space<vmem>>, vector<1x128xf32>
    %50 = vector.broadcast %49 : vector<1x128xf32> to vector<16x128xf32>
    %51 = arith.addf %48, %50 : vector<16x128xf32>
    %52 = arith.addf %51, %1 : vector<16x128xf32>
    %cst_55 = arith.constant 0.000000e+00 : f32
    %53 = vector.broadcast %cst_55 : f32 to vector<16x128xf32>
    %54 = arith.maximumf %52, %53 : vector<16x128xf32>
    %c0_56 = arith.constant 0 : index
    %c0_57 = arith.constant 0 : index
    %c0_58 = arith.constant 0 : index
    %55 = vector.load %arg6[%c0_56, %c0_57, %c0_58] : memref<1x16x128xf32, #tpu.memory_space<vmem>>, vector<1x16x128xf32>
    %56 = vector.shape_cast %55 : vector<1x16x128xf32> to vector<16x128xf32>
    %57 = vector.shape_cast %54 : vector<16x128xf32> to vector<1x16x128xf32>
    tpu.vector_store %arg6[%c0_56, %c0_57, %c0_58], %57 {strides = array<i32>} : memref<1x16x128xf32, #tpu.memory_space<vmem>>, vector<1x16x128xf32>,
    return
  }
  func.func @transform_0(%arg0: i32) -> (i32, i32, i32) {
    %c0_i32 = arith.constant 0 : i32
    %c0_i32_0 = arith.constant 0 : i32
    %c0_i32_1 = arith.constant 0 : i32
    return %arg0, %c0_i32, %c0_i32_0 : i32, i32, i32
  }
  func.func @transform_1(%arg0: i32) -> (i32, i32, i32) {
    %c0_i32 = arith.constant 0 : i32
    %c0_i32_0 = arith.constant 0 : i32
    %c0_i32_1 = arith.constant 0 : i32
    %c0_i32_2 = arith.constant 0 : i32
    return %c0_i32, %c0_i32_0, %c0_i32_1 : i32, i32, i32
  }
  func.func @transform_2(%arg0: i32) -> (i32, i32) {
    %c0_i32 = arith.constant 0 : i32
    %c0_i32_0 = arith.constant 0 : i32
    %c0_i32_1 = arith.constant 0 : i32
    return %c0_i32, %c0_i32_0 : i32, i32
  }
  func.func @transform_3(%arg0: i32) -> (i32, i32, i32) {
    %c0_i32 = arith.constant 0 : i32
    %c0_i32_0 = arith.constant 0 : i32
    %c0_i32_1 = arith.constant 0 : i32
    %c0_i32_2 = arith.constant 0 : i32
    return %c0_i32, %c0_i32_0, %c0_i32_1 : i32, i32, i32
  }
  func.func @transform_4(%arg0: i32) -> (i32, i32) {
    %c0_i32 = arith.constant 0 : i32
    %c0_i32_0 = arith.constant 0 : i32
    %c0_i32_1 = arith.constant 0 : i32
    return %c0_i32, %c0_i32_0 : i32, i32
  }
  func.func @transform_5(%arg0: i32) -> (i32, i32, i32) {
    %c0_i32 = arith.constant 0 : i32
    %c0_i32_0 = arith.constant 0 : i32
    %c0_i32_1 = arith.constant 0 : i32
    return %arg0, %c0_i32, %c0_i32_0 : i32, i32, i32
  }
}

</mosaic_0001>

<bundles_post_ra>
// kernel: tpu_custom_call.1
= control target key start
LH: loop header
LB: loop body
LE: loop exit
PB: predicated region body
PF: predicated region fallthrough
CT: control target
= control target key end

     0   :  { %10 = vsyncpa [#allocation5], 0  ;;  %s1469_s0 = inlined_call_operand.hbm [shape: f32[1,16,128], index: 0, kind: input, shape index: {}]   ;;  %s1470_s1 = inlined_call_operand.hbm [shape: bf16[3,128,128], index: 1, kind: input, shape index: {}]   ;;  %s1471_s2 = inlined_call_operand.vmem [shape: f32[1,128], index: 2, kind: input, shape index: {}]   ;;  %s1472_s3 = inlined_call_operand.hbm [shape: bf16[3,128,128], index: 3, kind: input, shape index: {}]   ;;  %s1473_s4 = inlined_call_operand.vmem [shape: f32[1,128], index: 4, kind: input, shape index: {}]   ;;  %s1474_s5 = inlined_call_operand.hbm [shape: f32[1,16,128], index: 5, kind: output, shape index: {}]  }
   0x1   :  { %11 = vsyncpa [#allocation8], 0 }
   0x2   :  { %12 = vsyncpa [#allocation6], 0  ;;  %s1290_s18 = smov [#allocation7]  }
   0x3   :  { %s30_s19 = sshll.u32 %s1290_s18, 4  ;;  %s31_s19 = int_to_ptr.vmem [resolvable:$true] %s30_s19 }
   0x4   :  { %s1212_s20 = scalar_lea.vmem %s31_s19, 3072  ;;  %p1217_p1 = scmp.lt.s32.totalorder %s31_s19, %s31_s19 }
   0x5   :  { %p1213_p0 = scmp.ne.s32.totalorder %s31_s19, %s1212_s20  ;;  %p1218_p2 = scmp.lt.s32.totalorder %s1212_s20, %s1212_s20 }
   0x7   :  { %p1219_p3 = por %p1218_p2, %p1217_p1 }
   0x9   :  { %p1220_p4 = pnand %p1219_p3, %p1213_p0 }
   0xb   :  { %1223 = shalt.err (!%p1220_p4)
}
   0xc   :  { %s1291_s21 = smov 64   ;;  %s1292_s22 = smov 4  }
   0xd   :  { %36 = dma.hbm_to_vmem [thread:$0]  %s1470_s1, 3072, %s31_s19, [#allocation8], %s1291_s21, %s1291_s21, %s1292_s22  }
   0xe   :  { %s1293_s25 = smov [#allocation4]  }
   0xf   :  { %s18_s26 = sshll.u32 %s1293_s25, 4  ;;  %s19_s26 = int_to_ptr.vmem [resolvable:$true] %s18_s26 }
  0x10   :  { %s1232_s27 = scalar_lea.vmem %s19_s26, 256  ;;  %p1237_p6 = scmp.lt.s32.totalorder %s19_s26, %s19_s26 }
  0x11   :  { %p1233_p5 = scmp.ne.s32.totalorder %s19_s26, %s1232_s27  ;;  %p1238_p7 = scmp.lt.s32.totalorder %s1232_s27, %s1232_s27 }
  0x13   :  { %p1239_p8 = por %p1238_p7, %p1237_p6 }
  0x15   :  { %p1240_p9 = pnand %p1239_p8, %p1233_p5 }
  0x17   :  { %1243 = shalt.err (!%p1240_p9)
}
  0x18   :  { %s1294_s28 = smov 128   ;;  %s1295_s29 = smov 8  }
  0x19   :  { %24 = dma.hbm_to_vmem [thread:$0]  %s1469_s0, 256, %s19_s26, [#allocation5], %s1294_s28, %s1294_s28, %s1295_s29  }
  0x1a   :  { %s1296_s1 = smov [#allocation9]  }
  0x1b   :  { %s44_s7 = sshll.u32 %s1296_s1, 4  ;;  %s45_s7 = int_to_ptr.vmem [resolvable:$true] %s44_s7 }
  0x1c   :  { %s1252_s8 = scalar_lea.vmem %s45_s7, 3072  ;;  %p1257_p11 = scmp.lt.s32.totalorder %s45_s7, %s45_s7 }
  0x1d   :  { %p1253_p10 = scmp.ne.s32.totalorder %s45_s7, %s1252_s8  ;;  %p1258_p12 = scmp.lt.s32.totalorder %s1252_s8, %s1252_s8 }
  0x1f   :  { %p1259_p13 = por %p1258_p12, %p1257_p11 }
  0x21   :  { %p1260_p0 = pnand %p1259_p13, %p1253_p10 }
  0x23   :  { %1263 = shalt.err (!%p1260_p0)
}
  0x24   :  { %50 = dma.hbm_to_vmem [thread:$0]  %s1472_s3, 3072, %s45_s7, [#allocation8], %s1291_s21, %s1291_s21, %s1292_s22  }
  0x25   :  { %1284 = dma.done.wait [#allocation5], 256  }
  0x26   :  { %1285 = vsyncadd [#allocation5], 4294967040 }
  0x27   :  { %1286 = dma.done.wait [#allocation8], 6144  }
  0x28   :  { %1287 = vsyncadd [#allocation8], 4294961152  ;;  %v1297_v0 = vmov 0.0   ;;  %vm1298_vm0 = vmmov 0   ;;  %v1150_v1 = vld [vmem:[#allocation7 + $0x78] sm:$0xff]   ;;  %v1152_v3 = vld [vmem:[#allocation7 + $0x70] sm:$0xff]  }
  0x29   :  { %1020 = vmatprep.subr.bf16.mxu0 %v1297_v0  ;;  %1040 = vmatprep.subr.bf16.mxu1 %v1297_v0  ;;  %v1151_v2 = vld [vmem:[#allocation7 + $0x38] sm:$0xff]   ;;  %v1153_v4 = vld [vmem:[#allocation7 + $0x30] sm:$0xff]   ;;  %v1154_v5 = vld [vmem:[#allocation7 + $0x68] sm:$0xff]   ;;  %vm65_vm1 = vcmask 1040384   ;;  %vm66_vm2 = vsmask.f32 256 }
  0x2a   :  { %1036 = vmatprep.mubr.msk.bf16.mxu0 %vm1298_vm0, %v1297_v0  ;;  %1056 = vmatprep.mubr.msk.bf16.mxu1 %vm1298_vm0, %v1297_v0  ;;  %v1155_v6 = vld [vmem:[#allocation7 + $0x28] sm:$0xff]   ;;  %vm71_vm3 = vsmask.f32 7938  ;;  %v1156_v7 = vld [vmem:[#allocation7 + $0x60] sm:$0xff]   ;;  %vm1355_vm4 = vmand %vm65_vm1, %vm66_vm2  ;;  %vm82_vm6 = vsmask.f32 4368 }
  0x2b   :  { %1021 = vmatpush3.bf16.msra.mxu0 %v1150_v1  ;;  %1041 = vmatpush3.bf16.msra.mxu1 %v1151_v2  ;;  %v1157_v8 = vld [vmem:[#allocation7 + $0x20] sm:$0xff]   ;;  %vm1360_vm5 = vmand %vm65_vm1, %vm71_vm3  ;;  %v1158_v11 = vld [vmem:[#allocation7 + $0x58] sm:$0xff]   ;;  %vm104_vm7 = vcmask 1043456   ;;  %vm157_vm10 = vsmask.f32 7424  ;;  %vm371_vm11 = vcmask 1046528  }
  0x2c   :  { %1022 = vmatprep.subr.bf16.mxu0 %v1297_v0  ;;  %1042 = vmatprep.subr.bf16.mxu1 %v1297_v0  ;;  %v1159_v12 = vld [vmem:[#allocation7 + $0x18] sm:$0xff]   ;;  %v1366_v13 = vld [vmem:[#allocation4] sm:$0xff]  ;;  %v73_v18 = vld [vmem:[#allocation2 + $0x8] sm:$0x1]  ;;  %s1299_s12 = smov [#allocation10]  }
  0x2d   :  { %v1368_v14 = vld [vmem:[#allocation4 + $0x8] sm:$0xff]  ;;  %v1160_v16 = vld [vmem:[#allocation7 + $0x50] sm:$0xff]   ;;  %v962_v19 = vpack.c.bf16 %v1366_v13, %v1366_v13  ;;  %v74_v22 = vsel %vm1360_vm5, 0, %v73_v18  ;;  %vm1382_vm8 = vmor %vm66_vm2, %vm82_vm6  ;;  %s889_s13 = sshll.u32 %s1299_s12, 4  ;;  %s890_s13 = int_to_ptr.vmem [resolvable:$true] %s889_s13 }
  0x2e   :  { %v68_v15 = vld [vmem:[#allocation2] sm:$0x1]  ;;  %v963_v20 = vpack.c.bf16 %v1368_v14, %v1368_v14  ;;  %v1161_v21 = vld [vmem:[#allocation7 + $0x10] sm:$0xff]   ;;  %75 = vst [vmem:[#allocation2 + $0x8] sm:$0x1] %v74_v22  ;;  %v1162_v30 = vld [vmem:[#allocation7 + $0x48] sm:$0xff]   ;;  %p1269_p2 = scmp.lt.s32.totalorder %s890_s13, %s890_s13 }
  0x2f   :  { %1023 = vmatpush3.bf16.msra.mxu0 %v1152_v3  ;;  %1043 = vmatpush3.bf16.msra.mxu1 %v1153_v4  ;;  %v69_v17 = vsel %vm1355_vm4, 0, %v68_v15  ;;  %v85_v23 = vshrl.u32 %v962_v19, 16  ;;  %v88_v24 = vshll.u32 %v962_v19, 16  ;;  %v1163_v31 = vld [vmem:[#allocation7 + $0x8] sm:$0xff]   ;;  %vm1388_vm9 = vmand %vm104_vm7, %vm71_vm3  ;;  %v1164_v37 = vld [vmem:[#allocation7 + $0x40] sm:$0xff]  }
  0x30   :  { %1024 = vmatprep.subr.bf16.mxu0 %v1297_v0  ;;  %1044 = vmatprep.subr.bf16.mxu1 %v1297_v0  ;;  %70 = vst [vmem:[#allocation2] sm:$0x1] %v69_v17  ;;  %v93_v25 = vshrl.u32 %v963_v20, 16  ;;  %v96_v26 = vshll.u32 %v963_v20, 16  ;;  %v1165_v40 = vld [vmem:[#allocation7] sm:$0xff]   ;;  %v1168_v53 = vld [vmem:[#allocation7 + $0xb8] sm:$0xff]  }
  0x31   :  { %v87_v28 = vrot.slane %v85_v23, 7  ;;  %v1169_v56 = vld [vmem:[#allocation7 + $0xb0] sm:$0xff]   ;;  %v1170_v57 = vld [vmem:[#allocation7 + $0xa8] sm:$0xff]   ;;  %v1171_v58 = vld [vmem:[#allocation7 + $0xa0] sm:$0xff]  }
  0x32   :  { %v95_v29 = vrot.slane %v93_v25, 7  ;;  %v1172_v59 = vld [vmem:[#allocation7 + $0x98] sm:$0xff]   ;;  %v1173_v60 = vld [vmem:[#allocation7 + $0x90] sm:$0xff]   ;;  %v1174_v62 = vld [vmem:[#allocation7 + $0x88] sm:$0xff]  }
  0x33   :  { %1025 = vmatpush3.bf16.msra.mxu0 %v1154_v5  ;;  %1045 = vmatpush3.bf16.msra.mxu1 %v1155_v6  ;;  %v90_v32 = vor.u32 %v88_v24, %v87_v28  ;;  %v91_v33 = vrot.slane %v87_v28, 4  ;;  %v1175_v1 = vld [vmem:[#allocation7 + $0x80] sm:$0xff]   ;;  %v1177_v5 = vld [vmem:[#allocation9 + $0x38] sm:$0xff]   ;;  %v1178_v6 = vld [vmem:[#allocation9 + $0x30] sm:$0xff]  }
  0x34   :  { %1026 = vmatprep.subr.bf16.mxu0 %v1297_v0  ;;  %1046 = vmatprep.subr.bf16.mxu1 %v1297_v0  ;;  %v98_v34 = vor.u32 %v96_v26, %v95_v29  ;;  %v100_v35 = vrot.slane %v95_v29, 4  ;;  %v1181_v15 = vld [vmem:[#allocation9 + $0x70] sm:$0xff]   ;;  %v1182_v17 = vld [vmem:[#allocation9 + $0x20] sm:$0xff]   ;;  %v1183_v19 = vld [vmem:[#allocation9 + $0x68] sm:$0xff]  }
  0x35   :  { %v110_v42 = vld [vmem:[#allocation2 + $0x8] sm:$0x1]  ;;  %v1184_v20 = vld [vmem:[#allocation9 + $0x18] sm:$0xff]   ;;  %v1186_v22 = vld [vmem:[#allocation9 + $0x10] sm:$0xff]  }
  0x36   :  { %v99_v38 = vsel %vm1382_vm8, %v91_v33, %v98_v34  ;;  %v111_v43 = vsel %vm1355_vm4, %v100_v35, %v110_v42  ;;  %v1187_v10 = vld [vmem:[#allocation9 + $0x58] sm:$0xff]   ;;  %v1188_v23 = vld [vmem:[#allocation9 + $0x8] sm:$0xff]   ;;  %v1189_v24 = vld [vmem:[#allocation9 + $0x50] sm:$0xff]  }
  0x37   :  { %1027 = vmatpush3.bf16.msra.mxu0 %v1156_v7  ;;  %1047 = vmatpush3.bf16.msra.mxu1 %v1157_v8  ;;  %v106_v39 = vld [vmem:[#allocation2] sm:$0xf]  ;;  %109 = vst [vmem:[#allocation2 + $0x4] sm:$0xf] %v99_v38  ;;  %112 = vst [vmem:[#allocation2 + $0x8] sm:$0x1] %v111_v43 }
  0x38   :  { %1028 = vmatprep.subr.bf16.mxu0 %v1297_v0  ;;  %1048 = vmatprep.subr.bf16.mxu1 %v1297_v0  ;;  %v107_v41 = vsel %vm1388_vm9, %v90_v32, %v106_v39  ;;  %v1179_v7 = vld [vmem:[#allocation9 + $0x78] sm:$0xff]   ;;  %v478_v8 = vld [vmem:[#allocation3] sm:$0x1]  ;;  %v1191_v26 = vld [vmem:[#allocation9 + $0x48] sm:$0xff]  }
  0x39   :  { %108 = vst [vmem:[#allocation2] sm:$0xf] %v107_v41  ;;  %v1190_v25 = vld [vmem:[#allocation9] sm:$0xff]   ;;  %v1196_v9 = vld [vmem:[#allocation9 + $0xb0] sm:$0xff]  }
  0x3a   :  { %v1193_v28 = vld [vmem:[#allocation9 + $0x40] sm:$0xff]  }
  0x3b   :  { %1029 = vmatpush3.bf16.msra.mxu0 %v1158_v11  ;;  %1049 = vmatpush3.bf16.msra.mxu1 %v1159_v12  ;;  %v1180_v11 = vld [vmem:[#allocation9 + $0x28] sm:$0xff]   ;;  %v479_v12 = vsel %vm1355_vm4, 0, %v478_v8 }
  0x3c   :  { %1030 = vmatprep.subr.bf16.mxu0 %v1297_v0  ;;  %1050 = vmatprep.subr.bf16.mxu1 %v1297_v0  ;;  %480 = vst [vmem:[#allocation3] sm:$0x1] %v479_v12 }
  0x3e   :  { %v114_v44 = vld [vmem:[#allocation2 + $0x4] sm:$0xf]  ;;  %v1167_v47 = vld [vmem:[#allocation2 + $0x8] ss:$0 sps:$4 sm:$0x11]  }
  0x3f   :  { %1031 = vmatpush3.bf16.msra.mxu0 %v1160_v16  ;;  %1051 = vmatpush3.bf16.msra.mxu1 %v1161_v21  ;;  %v166_v50 = vshll.u32 %v1167_v47, 16  ;;  %v373_v3 = vrot.slane %v1167_v47, 1  ;;  %v481_v16 = vld [vmem:[#allocation3 + $0x8] sm:$0x1]  ;;  %v1185_v21 = vld [vmem:[#allocation9 + $0x60] sm:$0xff]  }
  0x40   :  { %1032 = vmatprep.subr.bf16.mxu0 %v1297_v0  ;;  %1052 = vmatprep.subr.bf16.mxu1 %v1297_v0  ;;  %v113_v45 = vld [vmem:[#allocation2] sm:$0xf]  ;;  %v482_v18 = vsel %vm1360_vm5, 0, %v481_v16 }
  0x41   :  { %v904_v46 = vcombine.low %v113_v45, %v114_v44  ;;  %v168_v52 = vrot.slane %v166_v50, 1  ;;  %v350_v61 = vld [vmem:[#allocation2] sm:$0xe]  ;;  %483 = vst [vmem:[#allocation3 + $0x8] sm:$0x1] %v482_v18 }
  0x42   :  { %v922_v63 = vcombine.low %v350_v61, %v114_v44  ;;  %v1195_v18 = vld [vmem:[#allocation9 + $0xb8] sm:$0xff]  }
  0x43   :  { %1033 = vmatpush3.bf16.msra.mxu0 %v1162_v30  ;;  %1053 = vmatpush3.bf16.msra.mxu1 %v1163_v31  ;;  %v159_v48 = vshrl.u32 %v904_v46, 16  ;;  %v161_v49 = vshll.u32 %v904_v46, 16 }
  0x44   :  { %1034 = vmatprep.subr.bf16.mxu0 %v1297_v0  ;;  %1054 = vmatprep.subr.bf16.mxu1 %v1297_v0  ;;  %v372_v2 = vrot.slane %v922_v63, 1 }
  0x45   :  { %v163_v51 = vrot.slane %v161_v49, 1 }
  0x46   :  { %v374_v4 = vsel %vm371_vm11, %v372_v2, %v373_v3 }
  0x47   :  { %1035 = vmatpush3.bf16.msra.mxu0 %v1164_v37  ;;  %1055 = vmatpush3.bf16.msra.mxu1 %v1165_v40  ;;  %v164_v54 = vor.u32 %v163_v51, %v159_v48  ;;  %v931_v40 = vld [vmem:[%s1471_s2] ss:$0 sm:$0xff] }
  0x48   :  { %1060 = vmatprep.subr.bf16.mxu0 %v1297_v0  ;;  %1080 = vmatprep.subr.bf16.mxu1 %v1297_v0 }
  0x49   :  { %v169_v55 = vsel %vm157_vm10, %v164_v54, %v168_v52 }
  0x4a   :  { %1057 = vmatmul.mubr.bf16.vlgmr.msra.gmra.mxu1 %v904_v46  ;;  %1037 = vmatmul.mubr.bf16.vlgmr.msra.gmra.mxu0 %v169_v55 }
  0x4b   :  { %1096 = vmatprep.mubr.msk.bf16.mxu1 %vm1298_vm0, %v1297_v0  ;;  %1061 = vmatpush3.bf16.msra.mxu0 %v1168_v53 }
  0x4c   :  { %1076 = vmatprep.mubr.msk.bf16.mxu0 %vm1298_vm0, %v1297_v0  ;;  %1062 = vmatprep.subr.bf16.mxu0 %v1297_v0 }
  0x4d   :  { %1081 = vmatpush3.bf16.msra.mxu1 %v1179_v7 }
  0x4e   :  { %1082 = vmatprep.subr.bf16.mxu1 %v1297_v0 }
  0x4f   :  { %1063 = vmatpush3.bf16.msra.mxu0 %v1169_v56  ;;  %v510_v56 = vld [vmem:[#allocation3] sm:$0xf] }
  0x50   :  { %1064 = vmatprep.subr.bf16.mxu0 %v1297_v0 }
  0x51   :  { %1083 = vmatpush3.bf16.msra.mxu1 %v1181_v15 }
  0x52   :  { %1084 = vmatprep.subr.bf16.mxu1 %v1297_v0 }
  0x53   :  { %1065 = vmatpush3.bf16.msra.mxu0 %v1170_v57 }
  0x54   :  { %1066 = vmatprep.subr.bf16.mxu0 %v1297_v0 }
  0x55   :  { %1085 = vmatpush3.bf16.msra.mxu1 %v1183_v19  ;;  %v1197_v19 = vld [vmem:[#allocation9 + $0xa8] sm:$0xff]  }
  0x56   :  { %1086 = vmatprep.subr.bf16.mxu1 %v1297_v0 }
  0x57   :  { %1067 = vmatpush3.bf16.msra.mxu0 %v1171_v58 }
  0x58   :  { %1068 = vmatprep.subr.bf16.mxu0 %v1297_v0 }
  0x59   :  { %1087 = vmatpush3.bf16.msra.mxu1 %v1185_v21  ;;  %v1199_v21 = vld [vmem:[#allocation9 + $0x98] sm:$0xff]  }
  0x5a   :  { %1088 = vmatprep.subr.bf16.mxu1 %v1297_v0 }
  0x5b   :  { %1069 = vmatpush3.bf16.msra.mxu0 %v1172_v59 }
  0x5c   :  { %1070 = vmatprep.subr.bf16.mxu0 %v1297_v0 }
  0x5d   :  { %1089 = vmatpush3.bf16.msra.mxu1 %v1187_v10  ;;  %v1201_v10 = vld [vmem:[#allocation9 + $0x88] sm:$0xff]  }
  0x5e   :  { %1090 = vmatprep.subr.bf16.mxu1 %v1297_v0 }
  0x5f   :  { %1071 = vmatpush3.bf16.msra.mxu0 %v1173_v60 }
  0x60   :  { %1072 = vmatprep.subr.bf16.mxu0 %v1297_v0 }
  0x61   :  { %1091 = vmatpush3.bf16.msra.mxu1 %v1189_v24 }
  0x62   :  { %1092 = vmatprep.subr.bf16.mxu1 %v1297_v0 }
  0x63   :  { %1073 = vmatpush3.bf16.msra.mxu0 %v1174_v62  ;;  %v514_v62 = vld [vmem:[#allocation3 + $0x8] sm:$0x1] }
  0x64   :  { %1074 = vmatprep.subr.bf16.mxu0 %v1297_v0 }
  0x65   :  { %1093 = vmatpush3.bf16.msra.mxu1 %v1191_v26 }
  0x66   :  { %1094 = vmatprep.subr.bf16.mxu1 %v1297_v0 }
  0x67   :  { %1075 = vmatpush3.bf16.msra.mxu0 %v1175_v1 }
  0x68   :  { %1100 = vmatprep.subr.bf16.mxu0 %v1297_v0 }
  0x69   :  { %1095 = vmatpush3.bf16.msra.mxu1 %v1193_v28 }
  0x6a   :  { %1077 = vmatmul.mubr.bf16.vlgmr.msra.gmra.mxu0 %v374_v4  ;;  %1120 = vmatprep.subr.bf16.mxu1 %v1297_v0 }
  0x6b   :  { %1116 = vmatprep.mubr.msk.bf16.mxu0 %vm1298_vm0, %v1297_v0  ;;  %1101 = vmatpush3.bf16.msra.mxu0 %v1177_v5 }
  0x6c   :  { %1102 = vmatprep.subr.bf16.mxu0 %v1297_v0 }
  0x6f   :  { %1103 = vmatpush3.bf16.msra.mxu0 %v1178_v6 }
  0x70   :  { %1104 = vmatprep.subr.bf16.mxu0 %v1297_v0 }
  0x73   :  { %1105 = vmatpush3.bf16.msra.mxu0 %v1180_v11 }
  0x74   :  { %1106 = vmatprep.subr.bf16.mxu0 %v1297_v0 }
  0x77   :  { %1107 = vmatpush3.bf16.msra.mxu0 %v1182_v17 }
  0x78   :  { %1108 = vmatprep.subr.bf16.mxu0 %v1297_v0 }
  0x7b   :  { %1109 = vmatpush3.bf16.msra.mxu0 %v1184_v20  ;;  %v1198_v20 = vld [vmem:[#allocation9 + $0xa0] sm:$0xff]  }
  0x7c   :  { %1110 = vmatprep.subr.bf16.mxu0 %v1297_v0 }
  0x7f   :  { %1111 = vmatpush3.bf16.msra.mxu0 %v1186_v22  ;;  %v1200_v22 = vld [vmem:[#allocation9 + $0x90] sm:$0xff]  }
  0x80   :  { %1112 = vmatprep.subr.bf16.mxu0 %v1297_v0 }
  0x83   :  { %1113 = vmatpush3.bf16.msra.mxu0 %v1188_v23 }
  0x84   :  { %1114 = vmatprep.subr.bf16.mxu0 %v1297_v0 }
  0x87   :  { %1115 = vmatpush3.bf16.msra.mxu0 %v1190_v25  ;;  %v1202_v25 = vld [vmem:[#allocation9 + $0x80] sm:$0xff]  }
 0x10a   :  { %v343_v29 = vpop.f32.mrf.mxu1  ;;  %v253_v33 = vpop.f32.mrf.mxu0 }
 0x10b   :  { %v344_v38 = vadd.f32 %v343_v29, %v253_v33 }
 0x10c   :  { %v1058_v30 = vpop.f32.mrf.mxu1  ;;  %v1038_v34 = vpop.f32.mrf.mxu0 }
 0x10e   :  { %v346_v31 = vpop.f32.mrf.mxu1  ;;  %v256_v35 = vpop.f32.mrf.mxu0 }
 0x10f   :  { %v347_v43 = vadd.f32 %v346_v31, %v256_v35 }
 0x110   :  { %v1059_v32 = vpop.f32.mrf.mxu1  ;;  %v1039_v37 = vpop.f32.mrf.mxu0 }
 0x12a   :  { %v458_v39 = vpop.f32.mrf.mxu0 }
 0x12b   :  { %v465_v41 = vadd.f32 %v458_v39, %v344_v38 }
 0x12c   :  { %v1078_v42 = vpop.f32.mrf.mxu0 }
 0x12d   :  { %v474_v44 = vadd.f32 %v931_v40, %v465_v41 }
 0x12e   :  { %v461_v45 = vpop.f32.mrf.mxu0 }
 0x12f   :  { %v476_v46 = vmax.f32 %v474_v44, 0.0  ;;  %v466_v47 = vadd.f32 %v461_v45, %v347_v43 }
 0x130   :  { %v1079_v48 = vpop.f32.mrf.mxu0 }
 0x131   :  { %v964_v49 = vpack.c.bf16 %v476_v46, %v476_v46  ;;  %v475_v50 = vadd.f32 %v931_v40, %v466_v47 }
 0x133   :  { %v491_v51 = vshrl.u32 %v964_v49, 16  ;;  %v477_v52 = vmax.f32 %v475_v50, 0.0  ;;  %v494_v54 = vshll.u32 %v964_v49, 16 }
 0x135   :  { %v493_v53 = vrot.slane %v491_v51, 7  ;;  %v965_v55 = vpack.c.bf16 %v477_v52, %v477_v52 }
 0x137   :  { %v496_v57 = vor.u32 %v494_v54, %v493_v53  ;;  %v499_v58 = vshrl.u32 %v965_v55, 16  ;;  %v502_v61 = vshll.u32 %v965_v55, 16  ;;  %v497_v63 = vrot.slane %v493_v53, 4 }
 0x139   :  { %v511_v59 = vsel %vm1388_vm9, %v496_v57, %v510_v56  ;;  %v501_v60 = vrot.slane %v499_v58, 7 }
 0x13a   :  { %512 = vst [vmem:[#allocation3] sm:$0xf] %v511_v59 }
 0x13b   :  { %v504_v1 = vor.u32 %v502_v61, %v501_v60  ;;  %v506_v2 = vrot.slane %v501_v60, 4 }
 0x13d   :  { %v505_v3 = vsel %vm1382_vm8, %v497_v63, %v504_v1  ;;  %v515_v4 = vsel %vm1355_vm4, %v506_v2, %v514_v62 }
 0x13e   :  { %513 = vst [vmem:[#allocation3 + $0x4] sm:$0xf] %v505_v3  ;;  %516 = vst [vmem:[#allocation3 + $0x8] sm:$0x1] %v515_v4 }
 0x141   :  { %v517_v5 = vld [vmem:[#allocation3] sm:$0xf] }
 0x142   :  { %v753_v23 = vld [vmem:[#allocation3] sm:$0xe] }
 0x145   :  { %v518_v6 = vld [vmem:[#allocation3 + $0x4] sm:$0xf]  ;;  %v1194_v36 = vld [vmem:[#allocation3 + $0x8] ss:$0 sps:$4 sm:$0x11]  }
 0x146   :  { %v934_v7 = vcombine.low %v517_v5, %v518_v6  ;;  %v569_v11 = vshll.u32 %v1194_v36, 16  ;;  %v952_v24 = vcombine.low %v753_v23, %v518_v6  ;;  %v775_v28 = vrot.slane %v1194_v36, 1 }
 0x148   :  { %1117 = vmatmul.mubr.bf16.vlgmr.msra.gmra.mxu0 %v934_v7  ;;  %v564_v8 = vshll.u32 %v934_v7, 16  ;;  %v562_v12 = vshrl.u32 %v934_v7, 16  ;;  %v571_v17 = vrot.slane %v569_v11, 1  ;;  %v774_v26 = vrot.slane %v952_v24, 1 }
 0x14a   :  { %v566_v15 = vrot.slane %v564_v8, 1  ;;  %v776_v29 = vsel %vm371_vm11, %v774_v26, %v775_v28 }
 0x14c   :  { %v567_v16 = vor.u32 %v566_v15, %v562_v12 }
 0x14e   :  { %v572_v27 = vsel %vm157_vm10, %v567_v16, %v571_v17 }
 0x14f   :  { %1097 = vmatmul.mubr.bf16.vlgmr.msra.gmra.mxu1 %v572_v27 }
 0x150   :  { %1121 = vmatpush3.bf16.msra.mxu1 %v1195_v18  ;;  %1136 = vmatprep.mubr.msk.bf16.mxu1 %vm1298_vm0, %v1297_v0 }
 0x151   :  { %1122 = vmatprep.subr.bf16.mxu1 %v1297_v0 }
 0x154   :  { %1123 = vmatpush3.bf16.msra.mxu1 %v1196_v9 }
 0x155   :  { %1124 = vmatprep.subr.bf16.mxu1 %v1297_v0 }
 0x158   :  { %1125 = vmatpush3.bf16.msra.mxu1 %v1197_v19 }
 0x159   :  { %1126 = vmatprep.subr.bf16.mxu1 %v1297_v0 }
 0x15c   :  { %1127 = vmatpush3.bf16.msra.mxu1 %v1198_v20 }
 0x15d   :  { %1128 = vmatprep.subr.bf16.mxu1 %v1297_v0 }
 0x160   :  { %1129 = vmatpush3.bf16.msra.mxu1 %v1199_v21 }
 0x161   :  { %1130 = vmatprep.subr.bf16.mxu1 %v1297_v0 }
 0x164   :  { %1131 = vmatpush3.bf16.msra.mxu1 %v1200_v22 }
 0x165   :  { %1132 = vmatprep.subr.bf16.mxu1 %v1297_v0 }
 0x168   :  { %1133 = vmatpush3.bf16.msra.mxu1 %v1201_v10 }
 0x169   :  { %1134 = vmatprep.subr.bf16.mxu1 %v1297_v0  ;;  %v961_v0 = vld [vmem:[%s1473_s4] ss:$0 sm:$0xff]  ;;  %s1264_s4 = scalar_lea.vmem %s890_s13, 256 }
 0x16a   :  { %p1265_p1 = scmp.ne.s32.totalorder %s890_s13, %s1264_s4  ;;  %p1270_p3 = scmp.lt.s32.totalorder %s1264_s4, %s1264_s4 }
 0x16c   :  { %1135 = vmatpush3.bf16.msra.mxu1 %v1202_v25  ;;  %p1271_p4 = por %p1270_p3, %p1269_p2 }
 0x16e   :  { %p1272_p5 = pnand %p1271_p4, %p1265_p1 }
 0x16f   :  { %1137 = vmatmul.mubr.bf16.vlgmr.msra.gmra.mxu1 %v776_v29 }
 0x208   :  { %v746_v30 = vpop.f32.mrf.mxu0 }
 0x20a   :  { %v1118_v31 = vpop.f32.mrf.mxu0 }
 0x20c   :  { %v749_v32 = vpop.f32.mrf.mxu0 }
 0x20e   :  { %v1119_v33 = vpop.f32.mrf.mxu0 }
 0x20f   :  { %v656_v34 = vpop.f32.mrf.mxu1 }
 0x210   :  { %v747_v39 = vadd.f32 %v746_v30, %v656_v34 }
 0x211   :  { %v1098_v35 = vpop.f32.mrf.mxu1 }
 0x213   :  { %v659_v37 = vpop.f32.mrf.mxu1 }
 0x214   :  { %v750_v43 = vadd.f32 %v749_v32, %v659_v37 }
 0x215   :  { %v1099_v38 = vpop.f32.mrf.mxu1 }
 0x22f   :  { %v860_v40 = vpop.f32.mrf.mxu1 }
 0x230   :  { %v867_v41 = vadd.f32 %v860_v40, %v747_v39 }
 0x231   :  { %v1138_v42 = vpop.f32.mrf.mxu1 }
 0x232   :  { %v876_v44 = vadd.f32 %v961_v0, %v867_v41 }
 0x233   :  { %v863_v45 = vpop.f32.mrf.mxu1 }
 0x234   :  { %v878_v46 = vadd.f32 %v876_v44, %v1366_v13  ;;  %v868_v47 = vadd.f32 %v863_v45, %v750_v43 }
 0x235   :  { %v1139_v48 = vpop.f32.mrf.mxu1 }
 0x236   :  { %v880_v49 = vmax.f32 %v878_v46, 0.0  ;;  %v877_v50 = vadd.f32 %v961_v0, %v868_v47 }
 0x238   :  { %882 = vst [vmem:[#allocation10] sm:$0xff] %v880_v49  ;;  %v879_v51 = vadd.f32 %v877_v50, %v1368_v14 }
 0x23a   :  { %v881_v52 = vmax.f32 %v879_v51, 0.0 }
 0x23c   :  { %883 = vst [vmem:[#allocation10 + $0x8] sm:$0xff] %v881_v52 }
 0x23d   :  { %1275 = shalt.err (!%p1272_p5)
}
 0x23e   :  { %895 = dma.vmem_to_hbm [thread:$0]  %s890_s13, 256, %s1474_s5, [#allocation6], %s1294_s28, %s1294_s28, %s1295_s29  }
 0x23f   :  { %1288 = dma.done.wait [#allocation6], 256  }
 0x240   :  { %1289 = vsyncadd [#allocation6], 4294967040 }
 0x241   :  { %899 = vsyncpa [#allocation5], 1 }
 0x242   :  { %900 = vsyncpa [#allocation8], 1 }
 0x243   :  { %901 = vsyncpa [#allocation6], 1 }

</bundles_post_ra>
